<compile_context>
chip_gen: v6e
topology: v6e:2x2x1
jax: 0.10.0
libtpu: 0.0.40
codegen_flags: <defaults>
</compile_context>

<pallas_src>
import functools

import jax
import jax.numpy as jnp
from jax.experimental import pallas as pl
from jax.experimental.pallas import tpu as pltpu


# ----------------------------- Pallas kernel --------------------------------

def _qnet_fc_kernel(x_ref, w1_ref, b1_ref, w2_ref, b2_ref,
                    w3_ref, b3_ref, wh_ref, bh_ref, o_ref):
    # Fully fused dueling-MLP forward for one batch block; all refs in VMEM.
    # Activations are cast to the (bf16) weight dtype before each MXU matmul;
    # accumulation and bias/ReLU are f32.
    x = x_ref[...].astype(w1_ref.dtype)
    f = jnp.dot(x, w1_ref[...], preferred_element_type=jnp.float32)
    f = jnp.maximum(f + b1_ref[...], 0.0)                        # (BB, 512)

    f = jnp.dot(f.astype(w2_ref.dtype), w2_ref[...],
                preferred_element_type=jnp.float32)
    f = jnp.maximum(f + b2_ref[...], 0.0)                        # (BB, 256)

    # Both dueling-stream hidden layers fused into one (256, 512) matmul.
    h = jnp.dot(f.astype(w3_ref.dtype), w3_ref[...],
                preferred_element_type=jnp.float32)
    h = jnp.maximum(h + b3_ref[...], 0.0)                        # (BB, 512)

    # Head with the dueling combine pre-folded into (512, A) weights:
    # q = value + (adv - mean(adv)) == h @ wh + bh  exactly.
    q = jnp.dot(h.astype(wh_ref.dtype), wh_ref[...],
                preferred_element_type=jnp.float32)
    o_ref[...] = (q + bh_ref[...]).astype(o_ref.dtype)           # (BB, A)


# ----------------------------- wrapper ---------------------------------------

def _round_up(n, m):
    return ((n + m - 1) // m) * m


def qnet_fc_forward(params, x):
    """x: (B, obs) or (obs,) — matches QNet_FC.forward (dueling combine)."""
    single = (x.ndim == 1)
    if single:
        x = x[None]
    x = x.astype(jnp.float32)
    B, obs = x.shape
    A = params["bh"].shape[1]

    # Batch tiling: multiple of 8 sublanes, capped at 2048 rows per block so
    # the per-block activation footprint stays well under v7x's 64 MiB VMEM.
    BB = min(_round_up(B, 8), 2048)
    padded_B = _round_up(B, BB)
    if padded_B != B:
        x = jnp.pad(x, ((0, padded_B - B), (0, 0)))
    grid = (padded_B // BB,)

    weight_order = ("w1", "b1", "w2", "b2", "w3", "b3", "wh", "bh")
    weight_specs = [
        pl.BlockSpec(params[name].shape, lambda i: (0, 0))  # VMEM-resident
        for name in weight_order
    ]
    in_specs = [pl.BlockSpec((BB, obs), lambda i: (i, 0))] + weight_specs
    out_specs = pl.BlockSpec((BB, A), lambda i: (i, 0))

    flops = 2 * padded_B * (obs * 512 + 512 * 256 + 256 * 512 + 512 * A)
    weight_bytes = sum(int(params[n].size) * params[n].dtype.itemsize
                       for n in weight_order)
    bytes_accessed = padded_B * (obs + A) * 4 + weight_bytes

    # VMEM budget from the actual footprint: resident weights (x2 headroom),
    # double-buffered x/out blocks, and the intermediate activations.
    act_bytes = BB * (512 + 256 + 512 + A) * 4
    io_bytes = 2 * BB * (obs + A) * 4
    vmem_limit = int(1.5 * (2 * weight_bytes + act_bytes + io_bytes)) + (1 << 20)

    out = pl.pallas_call(
        _qnet_fc_kernel,
        out_shape=jax.ShapeDtypeStruct((padded_B, A), jnp.float32),
        grid_spec=pltpu.PrefetchScalarGridSpec(
            num_scalar_prefetch=0,
            grid=grid,
            in_specs=in_specs,
            out_specs=out_specs,
        ),
        cost_estimate=pl.CostEstimate(flops=flops, transcendentals=0,
                                      bytes_accessed=bytes_accessed),
        compiler_params=pltpu.CompilerParams(
            dimension_semantics=("parallel",),
            vmem_limit_bytes=vmem_limit,
        ),
    )(x, *(params[n] for n in weight_order))

    out = out[:B]
    return out[0] if single else out


# ----------------------------- params -----------------------------------------

def init_params(key, obs, action_space):
    """Returns (fused_bf16_params_for_kernel, raw_f32_params_for_reference)."""
    keys = jax.random.split(key, 12)

    def lin(kw, kb, fin, fout):
        w = jax.random.normal(kw, (fin, fout), jnp.float32) / (fin ** 0.5)
        b = jax.random.normal(kb, (1, fout), jnp.float32) * 0.01
        return w, b

    fw1, fb1 = lin(keys[0], keys[1], obs, 512)            # feature_layer[0]
    fw2, fb2 = lin(keys[2], keys[3], 512, 256)            # feature_layer[2]
    aw1, ab1 = lin(keys[4], keys[5], 256, 256)            # advantage_stream[0]
    aw2, ab2 = lin(keys[6], keys[7], 256, action_space)   # advantage_stream[2]
    vw1, vb1 = lin(keys[8], keys[9], 256, 256)            # value_stream[0]
    vw2, vb2 = lin(keys[10], keys[11], 256, 1)            # value_stream[2]

    raw = dict(fw1=fw1, fb1=fb1, fw2=fw2, fb2=fb2,
               aw1=aw1, ab1=ab1, aw2=aw2, ab2=ab2,
               vw1=vw1, vb1=vb1, vw2=vw2, vb2=vb2)

    A = action_space

    # Fuse the two stream hidden layers: one (256, 512) matmul.
    w3 = jnp.concatenate([aw1, vw1], axis=1)              # (256, 512)
    b3 = jnp.concatenate([ab1, vb1], axis=1)              # (1, 512)

    # Fold the dueling combine into the head (exact, done in f32):
    #   q = val + adv - mean(adv)  ==  [h_a, h_v] @ wh + bh
    M = jnp.eye(A, dtype=jnp.float32) - jnp.ones((A, A), jnp.float32) / A
    wh = jnp.concatenate([aw2 @ M, vw2 @ jnp.ones((1, A), jnp.float32)],
                         axis=0)                          # (512, A)
    bh = ab2 @ M + vb2                                    # (1, A)

    # bf16 weights (halves weight DMA); biases stay f32 (added to f32 acc).
    fused = dict(
        w1=fw1.astype(jnp.bfloat16), b1=fb1,
        w2=fw2.astype(jnp.bfloat16), b2=fb2,
        w3=w3.astype(jnp.bfloat16), b3=b3,
        wh=wh.astype(jnp.bfloat16), bh=bh,
    )
    return fused, raw


# ----------------------------- pure-JAX reference -----------------------------

def reference_forward(raw, x):
    if x.ndim == 1:
        x = x[None]
    hi = jax.lax.Precision.HIGHEST

    def mm(a, b):
        return jnp.dot(a, b, precision=hi)

    f = jnp.maximum(mm(x, raw["fw1"]) + raw["fb1"], 0.0)
    f = jnp.maximum(mm(f, raw["fw2"]) + raw["fb2"], 0.0)
    ha = jnp.maximum(mm(f, raw["aw1"]) + raw["ab1"], 0.0)
    hv = jnp.maximum(mm(f, raw["vw1"]) + raw["vb1"], 0.0)
    adv = mm(ha, raw["aw2"]) + raw["ab2"]
    val = mm(hv, raw["vw2"]) + raw["vb2"]
    return val + (adv - jnp.mean(adv, axis=1, keepdims=True))


# ----------------------------- main --------------------------------------------

if __name__ == "__main__":
    B, OBS, ACTIONS = 4, 128, 6

    key = jax.random.PRNGKey(0)
    pkey, xkey = jax.random.split(key)
    params, raw = init_params(pkey, OBS, ACTIONS)
    x = jax.random.normal(xkey, (B, OBS), dtype=jnp.float32)

    fwd = jax.jit(qnet_fc_forward)
    q = fwd(params, x)
    jax.block_until_ready(q)
    assert q.shape == (B, ACTIONS)

    # Verify the fused bf16-weight kernel against the unfused f32 reference.
    ref = reference_forward(raw, x)
    err = float(jnp.max(jnp.abs(q - ref)))
    assert err < 5e-2, f"mismatch vs reference: {err}"

    # Unbatched path (PyTorch advantages.dim() == 1 branch).
    q1 = qnet_fc_forward(params, x[0])
    jax.block_until_ready(q1)
    assert q1.shape == (ACTIONS,)
    err1 = float(jnp.max(jnp.abs(q1 - ref[0])))
    assert err1 < 5e-2, f"unbatched mismatch vs reference: {err1}"

    print("KERNEL_OK")
</pallas_src>

<mosaic_0001>
module attributes {stable_mosaic.version = 11 : i64} {
  func.func @_qnet_fc_kernel(%arg0: i32, %arg1: memref<8x128xf32, #tpu.memory_space<vmem>>, %arg2: memref<128x512xbf16, #tpu.memory_space<vmem>>, %arg3: memref<1x512xf32, #tpu.memory_space<vmem>>, %arg4: memref<512x256xbf16, #tpu.memory_space<vmem>>, %arg5: memref<1x256xf32, #tpu.memory_space<vmem>>, %arg6: memref<256x512xbf16, #tpu.memory_space<vmem>>, %arg7: memref<1x512xf32, #tpu.memory_space<vmem>>, %arg8: memref<512x6xbf16, #tpu.memory_space<vmem>>, %arg9: memref<1x6xf32, #tpu.memory_space<vmem>>, %arg10: memref<8x6xf32, #tpu.memory_space<vmem>>) attributes {dimension_semantics = [#tpu.dimension_semantics<parallel>], iteration_bounds = array<i64: 1>, scalar_prefetch = 0 : i64, scratch_operands = 0 : i64, tpu.core_type = #tpu.core_type<tc>, window_params = [{transform_indices = @transform_0, window_bounds = array<i64: 8, 128>}, {pipeline_mode = #tpu.pipeline_mode<synchronous>, transform_indices = @transform_1, window_bounds = array<i64: 128, 512>}, {pipeline_mode = #tpu.pipeline_mode<synchronous>, transform_indices = @transform_2, window_bounds = array<i64: 1, 512>}, {pipeline_mode = #tpu.pipeline_mode<synchronous>, transform_indices = @transform_3, window_bounds = array<i64: 512, 256>}, {pipeline_mode = #tpu.pipeline_mode<synchronous>, transform_indices = @transform_4, window_bounds = array<i64: 1, 256>}, {pipeline_mode = #tpu.pipeline_mode<synchronous>, transform_indices = @transform_5, window_bounds = array<i64: 256, 512>}, {pipeline_mode = #tpu.pipeline_mode<synchronous>, transform_indices = @transform_6, window_bounds = array<i64: 1, 512>}, {pipeline_mode = #tpu.pipeline_mode<synchronous>, transform_indices = @transform_7, window_bounds = array<i64: 512, 6>}, {pipeline_mode = #tpu.pipeline_mode<synchronous>, transform_indices = @transform_8, window_bounds = array<i64: 1, 6>}, {transform_indices = @transform_9, window_bounds = array<i64: 8, 6>}]} {
    %c0 = arith.constant 0 : index
    %c0_0 = arith.constant 0 : index
    %0 = vector.load %arg1[%c0, %c0_0] : memref<8x128xf32, #tpu.memory_space<vmem>>, vector<8x128xf32>
    %1 = arith.truncf %0 : vector<8x128xf32> to vector<8x128xbf16>
    %c0_1 = arith.constant 0 : index
    %c0_2 = arith.constant 0 : index
    %2 = vector.load %arg2[%c0_1, %c0_2] : memref<128x512xbf16, #tpu.memory_space<vmem>>, vector<128x512xbf16>
    %cst = arith.constant dense<0.000000e+00> : vector<8x512xf32>
    %3 = tpu.matmul %1, %2, %cst {dimension_numbers = #tpu.dot_dimension_numbers<[1], [0], [0], [1], [0, 0, 1, 1], [], []>} : vector<8x128xbf16>, vector<128x512xbf16>, vector<8x512xf32> -> vector<8x512xf32>
    %c0_3 = arith.constant 0 : index
    %c0_4 = arith.constant 0 : index
    %4 = vector.load %arg3[%c0_3, %c0_4] : memref<1x512xf32, #tpu.memory_space<vmem>>, vector<1x512xf32>
    %5 = vector.broadcast %4 : vector<1x512xf32> to vector<8x512xf32>
    %6 = arith.addf %3, %5 : vector<8x512xf32>
    %cst_5 = arith.constant 0.000000e+00 : f32
    %7 = vector.broadcast %cst_5 : f32 to vector<8x512xf32>
    %8 = arith.maximumf %6, %7 : vector<8x512xf32>
    %9 = arith.truncf %8 : vector<8x512xf32> to vector<8x512xbf16>
    %c0_6 = arith.constant 0 : index
    %c0_7 = arith.constant 0 : index
    %10 = vector.load %arg4[%c0_6, %c0_7] : memref<512x256xbf16, #tpu.memory_space<vmem>>, vector<512x256xbf16>
    %cst_8 = arith.constant dense<0.000000e+00> : vector<8x256xf32>
    %11 = tpu.matmul %9, %10, %cst_8 {dimension_numbers = #tpu.dot_dimension_numbers<[1], [0], [0], [1], [0, 0, 1, 1], [], []>} : vector<8x512xbf16>, vector<512x256xbf16>, vector<8x256xf32> -> vector<8x256xf32>
    %c0_9 = arith.constant 0 : index
    %c0_10 = arith.constant 0 : index
    %12 = vector.load %arg5[%c0_9, %c0_10] : memref<1x256xf32, #tpu.memory_space<vmem>>, vector<1x256xf32>
    %13 = vector.broadcast %12 : vector<1x256xf32> to vector<8x256xf32>
    %14 = arith.addf %11, %13 : vector<8x256xf32>
    %cst_11 = arith.constant 0.000000e+00 : f32
    %15 = vector.broadcast %cst_11 : f32 to vector<8x256xf32>
    %16 = arith.maximumf %14, %15 : vector<8x256xf32>
    %17 = arith.truncf %16 : vector<8x256xf32> to vector<8x256xbf16>
    %c0_12 = arith.constant 0 : index
    %c0_13 = arith.constant 0 : index
    %18 = vector.load %arg6[%c0_12, %c0_13] : memref<256x512xbf16, #tpu.memory_space<vmem>>, vector<256x512xbf16>
    %cst_14 = arith.constant dense<0.000000e+00> : vector<8x512xf32>
    %19 = tpu.matmul %17, %18, %cst_14 {dimension_numbers = #tpu.dot_dimension_numbers<[1], [0], [0], [1], [0, 0, 1, 1], [], []>} : vector<8x256xbf16>, vector<256x512xbf16>, vector<8x512xf32> -> vector<8x512xf32>
    %c0_15 = arith.constant 0 : index
    %c0_16 = arith.constant 0 : index
    %20 = vector.load %arg7[%c0_15, %c0_16] : memref<1x512xf32, #tpu.memory_space<vmem>>, vector<1x512xf32>
    %21 = vector.broadcast %20 : vector<1x512xf32> to vector<8x512xf32>
    %22 = arith.addf %19, %21 : vector<8x512xf32>
    %cst_17 = arith.constant 0.000000e+00 : f32
    %23 = vector.broadcast %cst_17 : f32 to vector<8x512xf32>
    %24 = arith.maximumf %22, %23 : vector<8x512xf32>
    %25 = arith.truncf %24 : vector<8x512xf32> to vector<8x512xbf16>
    %c0_18 = arith.constant 0 : index
    %c0_19 = arith.constant 0 : index
    %26 = vector.load %arg8[%c0_18, %c0_19] : memref<512x6xbf16, #tpu.memory_space<vmem>>, vector<512x6xbf16>
    %cst_20 = arith.constant dense<0.000000e+00> : vector<8x6xf32>
    %27 = tpu.matmul %25, %26, %cst_20 {dimension_numbers = #tpu.dot_dimension_numbers<[1], [0], [0], [1], [0, 0, 1, 1], [], []>} : vector<8x512xbf16>, vector<512x6xbf16>, vector<8x6xf32> -> vector<8x6xf32>
    %c0_21 = arith.constant 0 : index
    %c0_22 = arith.constant 0 : index
    %28 = vector.load %arg9[%c0_21, %c0_22] : memref<1x6xf32, #tpu.memory_space<vmem>>, vector<1x6xf32>
    %29 = vector.broadcast %28 : vector<1x6xf32> to vector<8x6xf32>
    %30 = arith.addf %27, %29 : vector<8x6xf32>
    %c0_23 = arith.constant 0 : index
    %c0_24 = arith.constant 0 : index
    %31 = vector.load %arg10[%c0_23, %c0_24] : memref<8x6xf32, #tpu.memory_space<vmem>>, vector<8x6xf32>
    tpu.vector_store %arg10[%c0_23, %c0_24], %30 {strides = array<i32>} : memref<8x6xf32, #tpu.memory_space<vmem>>, vector<8x6xf32>,
    return
  }
  func.func @transform_0(%arg0: i32) -> (i32, i32) {
    %c0_i32 = arith.constant 0 : i32
    %c0_i32_0 = arith.constant 0 : i32
    return %arg0, %c0_i32 : i32, i32
  }
  func.func @transform_1(%arg0: i32) -> (i32, i32) {
    %c0_i32 = arith.constant 0 : i32
    %c0_i32_0 = arith.constant 0 : i32
    %c0_i32_1 = arith.constant 0 : i32
    return %c0_i32, %c0_i32_0 : i32, i32
  }
  func.func @transform_2(%arg0: i32) -> (i32, i32) {
    %c0_i32 = arith.constant 0 : i32
    %c0_i32_0 = arith.constant 0 : i32
    %c0_i32_1 = arith.constant 0 : i32
    return %c0_i32, %c0_i32_0 : i32, i32
  }
  func.func @transform_3(%arg0: i32) -> (i32, i32) {
    %c0_i32 = arith.constant 0 : i32
    %c0_i32_0 = arith.constant 0 : i32
    %c0_i32_1 = arith.constant 0 : i32
    return %c0_i32, %c0_i32_0 : i32, i32
  }
  func.func @transform_4(%arg0: i32) -> (i32, i32) {
    %c0_i32 = arith.constant 0 : i32
    %c0_i32_0 = arith.constant 0 : i32
    %c0_i32_1 = arith.constant 0 : i32
    return %c0_i32, %c0_i32_0 : i32, i32
  }
  func.func @transform_5(%arg0: i32) -> (i32, i32) {
    %c0_i32 = arith.constant 0 : i32
    %c0_i32_0 = arith.constant 0 : i32
    %c0_i32_1 = arith.constant 0 : i32
    return %c0_i32, %c0_i32_0 : i32, i32
  }
  func.func @transform_6(%arg0: i32) -> (i32, i32) {
    %c0_i32 = arith.constant 0 : i32
    %c0_i32_0 = arith.constant 0 : i32
    %c0_i32_1 = arith.constant 0 : i32
    return %c0_i32, %c0_i32_0 : i32, i32
  }
  func.func @transform_7(%arg0: i32) -> (i32, i32) {
    %c0_i32 = arith.constant 0 : i32
    %c0_i32_0 = arith.constant 0 : i32
    %c0_i32_1 = arith.constant 0 : i32
    return %c0_i32, %c0_i32_0 : i32, i32
  }
  func.func @transform_8(%arg0: i32) -> (i32, i32) {
    %c0_i32 = arith.constant 0 : i32
    %c0_i32_0 = arith.constant 0 : i32
    %c0_i32_1 = arith.constant 0 : i32
    return %c0_i32, %c0_i32_0 : i32, i32
  }
  func.func @transform_9(%arg0: i32) -> (i32, i32) {
    %c0_i32 = arith.constant 0 : i32
    %c0_i32_0 = arith.constant 0 : i32
    return %arg0, %c0_i32 : i32, i32
  }
}

</mosaic_0001>

<bundles_post_ra>
// kernel: qnet_fc_forward.1
= control target key start
LH: loop header
LB: loop body
LE: loop exit
PB: predicated region body
PF: predicated region fallthrough
CT: control target
= control target key end

     0   :  { %14 = vsyncpa [#allocation3], 0  ;;  %s2553_s0 = inlined_call_operand.vmem [shape: f32[8,128], index: 0, kind: input, shape index: {}]   ;;  %s2554_s1 = inlined_call_operand.vmem [shape: bf16[128,512], index: 1, kind: input, shape index: {}]   ;;  %s2555_s2 = inlined_call_operand.vmem [shape: f32[1,512], index: 2, kind: input, shape index: {}]   ;;  %s2556_s3 = inlined_call_operand.hbm [shape: bf16[512,256], index: 3, kind: input, shape index: {}]   ;;  %s2557_s4 = inlined_call_operand.vmem [shape: f32[1,256], index: 4, kind: input, shape index: {}]   ;;  %s2558_s5 = inlined_call_operand.hbm [shape: bf16[256,512], index: 5, kind: input, shape index: {}]   ;;  %s2559_s6 = inlined_call_operand.vmem [shape: f32[1,512], index: 6, kind: input, shape index: {}]   ;;  %s2560_s7 = inlined_call_operand.vmem [shape: bf16[512,6], index: 7, kind: input, shape index: {}]   ;;  %s2561_s8 = inlined_call_operand.vmem [shape: f32[1,6], index: 8, kind: input, shape index: {}]   ;;  %s2562_s9 = inlined_call_operand.vmem [shape: f32[8,6], index: 9, kind: output, shape index: {}]  }
   0x1   :  { %15 = vsyncpa [#allocation5], 0  ;;  %s2256_s30 = smov [#allocation2]  }
   0x2   :  { %s27_s10 = sshll.u32 %s2256_s30, 4  ;;  %s28_s10 = int_to_ptr.vmem [resolvable:$true] %s27_s10 }
   0x3   :  { %s2220_s11 = scalar_lea.vmem %s28_s10, 8192  ;;  %p2225_p1 = scmp.lt.s32.totalorder %s28_s10, %s28_s10 }
   0x4   :  { %p2221_p0 = scmp.ne.s32.totalorder %s28_s10, %s2220_s11  ;;  %p2226_p2 = scmp.lt.s32.totalorder %s2220_s11, %s2220_s11 }
   0x6   :  { %p2227_p3 = por %p2226_p2, %p2225_p1 }
   0x8   :  { %p2228_p4 = pnand %p2227_p3, %p2221_p0 }
   0xa   :  { %2231 = shalt.err (!%p2228_p4)
}
   0xb   :  { %s2257_s12 = smov 128   ;;  %s2258_s13 = smov 8  }
   0xc   :  { %33 = dma.hbm_to_vmem [thread:$0]  %s2556_s3, 8192, %s28_s10, [#allocation3], %s2257_s12, %s2257_s12, %s2258_s13  }
   0xd   :  { %s2259_s16 = smov [#allocation4]  }
   0xe   :  { %s41_s17 = sshll.u32 %s2259_s16, 4  ;;  %s42_s17 = int_to_ptr.vmem [resolvable:$true] %s41_s17 }
   0xf   :  { %s2240_s18 = scalar_lea.vmem %s42_s17, 8192  ;;  %p2245_p6 = scmp.lt.s32.totalorder %s42_s17, %s42_s17 }
  0x10   :  { %p2241_p5 = scmp.ne.s32.totalorder %s42_s17, %s2240_s18  ;;  %p2246_p7 = scmp.lt.s32.totalorder %s2240_s18, %s2240_s18 }
  0x12   :  { %p2247_p8 = por %p2246_p7, %p2245_p6 }
  0x14   :  { %p2248_p9 = pnand %p2247_p8, %p2241_p5 }
  0x16   :  { %2251 = shalt.err (!%p2248_p9)
}
  0x17   :  { %s2260_s19 = smov 256   ;;  %s2261_s20 = smov 16  }
  0x18   :  { %47 = dma.hbm_to_vmem [thread:$0]  %s2558_s5, 8192, %s42_s17, [#allocation5], %s2260_s19, %s2260_s19, %s2261_s20  }
  0x19   :  { %2252 = dma.done.wait [#allocation3], 8192  }
  0x1a   :  { %2253 = vsyncadd [#allocation3], 4294959104 }
  0x1b   :  { %2254 = dma.done.wait [#allocation5], 8192  }
  0x1c   :  { %2255 = vsyncadd [#allocation5], 4294959104  ;;  %v2262_v0 = vmov 0   ;;  %v1940_v1 = vld [vmem:[%s2554_s1 + $0xe4] ss:$16 sps:$4 sm:$0xff]   ;;  %vm1688_vm0 = vcmask 48128  }
  0x1d   :  { %309 = vmatprep.mubr.bf16.mxu0 %v2262_v0  ;;  %350 = vmatprep.mubr.bf16.mxu1 %v2262_v0  ;;  %v1942_v2 = vld [vmem:[%s2554_s1 + $0xec] ss:$16 sps:$4 sm:$0xff]   ;;  %v1944_v3 = vld [vmem:[%s2554_s1 + $0xe0] ss:$16 sps:$4 sm:$0xff]   ;;  %v1945_v4 = vld [vmem:[%s2554_s1 + $0xe8] ss:$16 sps:$4 sm:$0xff]  }
  0x1e   :  { %277 = vmatprep.subr.bf16.mxu0 %v1940_v1  ;;  %318 = vmatprep.subr.bf16.mxu1 %v1942_v2  ;;  %v1946_v5 = vld [vmem:[%s2554_s1 + $0xc4] ss:$16 sps:$4 sm:$0xff]   ;;  %v1948_v6 = vld [vmem:[%s2554_s1 + $0xcc] ss:$16 sps:$4 sm:$0xff]   ;;  %v1950_v7 = vld [vmem:[%s2554_s1 + $0xc0] ss:$16 sps:$4 sm:$0xff]  }
  0x1f   :  { %278 = vmatpush1.bf16.msra.mxu0 %v1944_v3  ;;  %319 = vmatpush1.bf16.msra.mxu1 %v1945_v4  ;;  %v1951_v8 = vld [vmem:[%s2554_s1 + $0xc8] ss:$16 sps:$4 sm:$0xff]   ;;  %v1952_v9 = vld [vmem:[%s2554_s1 + $0xa4] ss:$16 sps:$4 sm:$0xff]   ;;  %v1954_v10 = vld [vmem:[%s2554_s1 + $0xac] ss:$16 sps:$4 sm:$0xff]  }
  0x20   :  { %279 = vmatprep.subr.bf16.mxu0 %v1946_v5  ;;  %320 = vmatprep.subr.bf16.mxu1 %v1948_v6  ;;  %v1956_v11 = vld [vmem:[%s2554_s1 + $0xa0] ss:$16 sps:$4 sm:$0xff]   ;;  %v1957_v12 = vld [vmem:[%s2554_s1 + $0xa8] ss:$16 sps:$4 sm:$0xff]   ;;  %v1958_v13 = vld [vmem:[%s2554_s1 + $0x84] ss:$16 sps:$4 sm:$0xff]  }
  0x21   :  { %v1960_v14 = vld [vmem:[%s2554_s1 + $0x8c] ss:$16 sps:$4 sm:$0xff]   ;;  %v1962_v15 = vld [vmem:[%s2554_s1 + $0x80] ss:$16 sps:$4 sm:$0xff]   ;;  %v1963_v16 = vld [vmem:[%s2554_s1 + $0x88] ss:$16 sps:$4 sm:$0xff]  }
  0x22   :  { %v1964_v17 = vld [vmem:[%s2554_s1 + $0x64] ss:$16 sps:$4 sm:$0xff]   ;;  %v1966_v18 = vld [vmem:[%s2554_s1 + $0x6c] ss:$16 sps:$4 sm:$0xff]   ;;  %v1968_v19 = vld [vmem:[%s2554_s1 + $0x60] ss:$16 sps:$4 sm:$0xff]  }
  0x23   :  { %280 = vmatpush1.bf16.msra.mxu0 %v1950_v7  ;;  %321 = vmatpush1.bf16.msra.mxu1 %v1951_v8  ;;  %v1969_v20 = vld [vmem:[%s2554_s1 + $0x68] ss:$16 sps:$4 sm:$0xff]   ;;  %v1970_v21 = vld [vmem:[%s2554_s1 + $0x44] ss:$16 sps:$4 sm:$0xff]   ;;  %v1972_v22 = vld [vmem:[%s2554_s1 + $0x4c] ss:$16 sps:$4 sm:$0xff]  }
  0x24   :  { %281 = vmatprep.subr.bf16.mxu0 %v1952_v9  ;;  %322 = vmatprep.subr.bf16.mxu1 %v1954_v10  ;;  %v1974_v23 = vld [vmem:[%s2554_s1 + $0x40] ss:$16 sps:$4 sm:$0xff]   ;;  %v1975_v24 = vld [vmem:[%s2554_s1 + $0x48] ss:$16 sps:$4 sm:$0xff]   ;;  %v1976_v25 = vld [vmem:[%s2554_s1 + $0x24] ss:$16 sps:$4 sm:$0xff]  }
  0x25   :  { %v1978_v26 = vld [vmem:[%s2554_s1 + $0x2c] ss:$16 sps:$4 sm:$0xff]   ;;  %v1980_v27 = vld [vmem:[%s2554_s1 + $0x20] ss:$16 sps:$4 sm:$0xff]   ;;  %v1981_v28 = vld [vmem:[%s2554_s1 + $0x28] ss:$16 sps:$4 sm:$0xff]  }
  0x26   :  { %v1982_v29 = vld [vmem:[%s2554_s1 + $0x4] ss:$16 sps:$4 sm:$0xff]   ;;  %v1984_v30 = vld [vmem:[%s2554_s1 + $0xc] ss:$16 sps:$4 sm:$0xff]   ;;  %v1986_v31 = vld [vmem:[%s2554_s1] ss:$16 sps:$4 sm:$0xff]  }
  0x27   :  { %282 = vmatpush1.bf16.msra.mxu0 %v1956_v11  ;;  %323 = vmatpush1.bf16.msra.mxu1 %v1957_v12  ;;  %v1987_v32 = vld [vmem:[%s2554_s1 + $0x8] ss:$16 sps:$4 sm:$0xff]   ;;  %v61_v33 = vld [vmem:[%s2553_s0] sm:$0xff]  ;;  %v1990_v34 = vld [vmem:[#allocation2 + $0x74] ss:$8 sps:$4 sm:$0xff]  }
  0x28   :  { %283 = vmatprep.subr.bf16.mxu0 %v1958_v13  ;;  %324 = vmatprep.subr.bf16.mxu1 %v1960_v14  ;;  %v1993_v35 = vld [vmem:[#allocation2 + $0x174] ss:$8 sps:$4 sm:$0xff]   ;;  %v62_v36 = vpack.c.bf16 %v61_v33, %v61_v33  ;;  %v1988_v37 = vld [vmem:[#allocation2 + $0x70] ss:$8 sps:$4 sm:$0xff]   ;;  %v1996_v39 = vld [vmem:[#allocation2 + $0x64] ss:$8 sps:$4 sm:$0xff]  }
  0x29   :  { %v1991_v38 = vld [vmem:[#allocation2 + $0x170] ss:$8 sps:$4 sm:$0xff]   ;;  %v1999_v40 = vld [vmem:[#allocation2 + $0x164] ss:$8 sps:$4 sm:$0xff]   ;;  %v1994_v41 = vld [vmem:[#allocation2 + $0x60] ss:$8 sps:$4 sm:$0xff]  }
  0x2a   :  { %v1997_v42 = vld [vmem:[#allocation2 + $0x160] ss:$8 sps:$4 sm:$0xff]   ;;  %v2002_v43 = vld [vmem:[#allocation2 + $0x54] ss:$8 sps:$4 sm:$0xff]   ;;  %v2000_v45 = vld [vmem:[#allocation2 + $0x50] ss:$8 sps:$4 sm:$0xff]  }
  0x2b   :  { %284 = vmatpush1.bf16.msra.mxu0 %v1962_v15  ;;  %325 = vmatpush1.bf16.msra.mxu1 %v1963_v16  ;;  %v2005_v44 = vld [vmem:[#allocation2 + $0x154] ss:$8 sps:$4 sm:$0xff]   ;;  %v2003_v46 = vld [vmem:[#allocation2 + $0x150] ss:$8 sps:$4 sm:$0xff]   ;;  %v2008_v47 = vld [vmem:[#allocation2 + $0x44] ss:$8 sps:$4 sm:$0xff]  }
  0x2c   :  { %285 = vmatprep.subr.bf16.mxu0 %v1964_v17  ;;  %326 = vmatprep.subr.bf16.mxu1 %v1966_v18  ;;  %v2011_v48 = vld [vmem:[#allocation2 + $0x144] ss:$8 sps:$4 sm:$0xff]   ;;  %v2006_v49 = vld [vmem:[#allocation2 + $0x40] ss:$8 sps:$4 sm:$0xff]   ;;  %v2014_v51 = vld [vmem:[#allocation2 + $0x34] ss:$8 sps:$4 sm:$0xff]  }
  0x2d   :  { %v2009_v50 = vld [vmem:[#allocation2 + $0x140] ss:$8 sps:$4 sm:$0xff]   ;;  %v2017_v52 = vld [vmem:[#allocation2 + $0x134] ss:$8 sps:$4 sm:$0xff]   ;;  %v2012_v53 = vld [vmem:[#allocation2 + $0x30] ss:$8 sps:$4 sm:$0xff]  }
  0x2e   :  { %v2015_v54 = vld [vmem:[#allocation2 + $0x130] ss:$8 sps:$4 sm:$0xff]   ;;  %v2020_v55 = vld [vmem:[#allocation2 + $0x24] ss:$8 sps:$4 sm:$0xff]   ;;  %v2018_v57 = vld [vmem:[#allocation2 + $0x20] ss:$8 sps:$4 sm:$0xff]  }
  0x2f   :  { %286 = vmatpush1.bf16.msra.mxu0 %v1968_v19  ;;  %327 = vmatpush1.bf16.msra.mxu1 %v1969_v20  ;;  %v2023_v56 = vld [vmem:[#allocation2 + $0x124] ss:$8 sps:$4 sm:$0xff]   ;;  %v2021_v58 = vld [vmem:[#allocation2 + $0x120] ss:$8 sps:$4 sm:$0xff]   ;;  %v2026_v59 = vld [vmem:[#allocation2 + $0x14] ss:$8 sps:$4 sm:$0xff]  }
  0x30   :  { %287 = vmatprep.subr.bf16.mxu0 %v1970_v21  ;;  %328 = vmatprep.subr.bf16.mxu1 %v1972_v22  ;;  %v2029_v60 = vld [vmem:[#allocation2 + $0x114] ss:$8 sps:$4 sm:$0xff]   ;;  %v2024_v61 = vld [vmem:[#allocation2 + $0x10] ss:$8 sps:$4 sm:$0xff]   ;;  %v2032_v63 = vld [vmem:[#allocation2 + $0x4] ss:$8 sps:$4 sm:$0xff]  }
  0x31   :  { %v2027_v62 = vld [vmem:[#allocation2 + $0x110] ss:$8 sps:$4 sm:$0xff]   ;;  %v2035_v0 = vld [vmem:[#allocation2 + $0x104] ss:$8 sps:$4 sm:$0xff]   ;;  %v2030_v1 = vld [vmem:[#allocation2] ss:$8 sps:$4 sm:$0xff]  }
  0x32   :  { %v2033_v2 = vld [vmem:[#allocation2 + $0x100] ss:$8 sps:$4 sm:$0xff]   ;;  %v2038_v3 = vld [vmem:[#allocation2 + $0xf4] ss:$8 sps:$4 sm:$0xff]   ;;  %v2036_v5 = vld [vmem:[#allocation2 + $0xf0] ss:$8 sps:$4 sm:$0xff]  }
  0x33   :  { %288 = vmatpush1.bf16.msra.mxu0 %v1974_v23  ;;  %329 = vmatpush1.bf16.msra.mxu1 %v1975_v24  ;;  %v2041_v4 = vld [vmem:[#allocation2 + $0x1f4] ss:$8 sps:$4 sm:$0xff]   ;;  %v2039_v6 = vld [vmem:[#allocation2 + $0x1f0] ss:$8 sps:$4 sm:$0xff]   ;;  %v2044_v7 = vld [vmem:[#allocation2 + $0xe4] ss:$8 sps:$4 sm:$0xff]  }
  0x34   :  { %289 = vmatprep.subr.bf16.mxu0 %v1976_v25  ;;  %330 = vmatprep.subr.bf16.mxu1 %v1978_v26  ;;  %v2047_v8 = vld [vmem:[#allocation2 + $0x1e4] ss:$8 sps:$4 sm:$0xff]   ;;  %v2042_v9 = vld [vmem:[#allocation2 + $0xe0] ss:$8 sps:$4 sm:$0xff]   ;;  %v2050_v11 = vld [vmem:[#allocation2 + $0xd4] ss:$8 sps:$4 sm:$0xff]  }
  0x35   :  { %v2045_v10 = vld [vmem:[#allocation2 + $0x1e0] ss:$8 sps:$4 sm:$0xff]   ;;  %v2053_v12 = vld [vmem:[#allocation2 + $0x1d4] ss:$8 sps:$4 sm:$0xff]   ;;  %v2048_v13 = vld [vmem:[#allocation2 + $0xd0] ss:$8 sps:$4 sm:$0xff]  }
  0x36   :  { %v2051_v14 = vld [vmem:[#allocation2 + $0x1d0] ss:$8 sps:$4 sm:$0xff]   ;;  %v2056_v15 = vld [vmem:[#allocation2 + $0xc4] ss:$8 sps:$4 sm:$0xff]   ;;  %v2054_v17 = vld [vmem:[#allocation2 + $0xc0] ss:$8 sps:$4 sm:$0xff]  }
  0x37   :  { %290 = vmatpush1.bf16.msra.mxu0 %v1980_v27  ;;  %331 = vmatpush1.bf16.msra.mxu1 %v1981_v28  ;;  %v2059_v16 = vld [vmem:[#allocation2 + $0x1c4] ss:$8 sps:$4 sm:$0xff]   ;;  %v2057_v18 = vld [vmem:[#allocation2 + $0x1c0] ss:$8 sps:$4 sm:$0xff]   ;;  %v2062_v19 = vld [vmem:[#allocation2 + $0xb4] ss:$8 sps:$4 sm:$0xff]  }
  0x38   :  { %291 = vmatprep.subr.bf16.mxu0 %v1982_v29  ;;  %332 = vmatprep.subr.bf16.mxu1 %v1984_v30  ;;  %v2065_v20 = vld [vmem:[#allocation2 + $0x1b4] ss:$8 sps:$4 sm:$0xff]   ;;  %v2060_v21 = vld [vmem:[#allocation2 + $0xb0] ss:$8 sps:$4 sm:$0xff]   ;;  %v2068_v23 = vld [vmem:[#allocation2 + $0xa4] ss:$8 sps:$4 sm:$0xff]  }
  0x39   :  { %v2063_v22 = vld [vmem:[#allocation2 + $0x1b0] ss:$8 sps:$4 sm:$0xff]   ;;  %v2071_v24 = vld [vmem:[#allocation2 + $0x1a4] ss:$8 sps:$4 sm:$0xff]   ;;  %v2066_v25 = vld [vmem:[#allocation2 + $0xa0] ss:$8 sps:$4 sm:$0xff]  }
  0x3a   :  { %v2069_v26 = vld [vmem:[#allocation2 + $0x1a0] ss:$8 sps:$4 sm:$0xff]   ;;  %v2074_v27 = vld [vmem:[#allocation2 + $0x94] ss:$8 sps:$4 sm:$0xff]   ;;  %v2072_v29 = vld [vmem:[#allocation2 + $0x90] ss:$8 sps:$4 sm:$0xff]  }
  0x3b   :  { %292 = vmatpush1.bf16.msra.mxu0 %v1986_v31  ;;  %333 = vmatpush1.bf16.msra.mxu1 %v1987_v32  ;;  %v2077_v28 = vld [vmem:[#allocation2 + $0x194] ss:$8 sps:$4 sm:$0xff]   ;;  %v2075_v30 = vld [vmem:[#allocation2 + $0x190] ss:$8 sps:$4 sm:$0xff]   ;;  %v2080_v31 = vld [vmem:[#allocation2 + $0x84] ss:$8 sps:$4 sm:$0xff]  }
  0x3c   :  { %763 = vmatprep.subr.bf16.mxu0 %v1990_v34  ;;  %804 = vmatprep.subr.bf16.mxu1 %v1993_v35  ;;  %v2083_v32 = vld [vmem:[#allocation2 + $0x184] ss:$8 sps:$4 sm:$0xff]   ;;  %v2078_v33 = vld [vmem:[#allocation2 + $0x80] ss:$8 sps:$4 sm:$0xff]  }
  0x3d   :  { %v2081_v34 = vld [vmem:[#allocation2 + $0x180] ss:$8 sps:$4 sm:$0xff]   ;;  %v2086_v35 = vld [vmem:[#allocation4 + $0xe4] ss:$16 sps:$4 sm:$0xff]  }
  0x3e   :  { %310 = vmatmul.mubr.bf16.vlgmr.msra.gmra.mxu0 %v62_v36  ;;  %351 = vmatmul.mubr.bf16.vlgmr.msra.gmra.mxu1 %v62_v36  ;;  %v2089_v36 = vld [vmem:[#allocation4 + $0xec] ss:$16 sps:$4 sm:$0xff]  }
  0x3f   :  { %764 = vmatpush1.bf16.msra.mxu0 %v1988_v37  ;;  %805 = vmatpush1.bf16.msra.mxu1 %v1991_v38  ;;  %v97_v37 = vlaneseq }
  0x40   :  { %765 = vmatprep.subr.bf16.mxu0 %v1996_v39  ;;  %806 = vmatprep.subr.bf16.mxu1 %v1999_v40 }
  0x41   :  { %v2418_v38 = vshrl.u32 %v97_v37, 7  ;;  %v2135_v37 = vld [vmem:[#allocation4 + $0x1e8] ss:$16 sps:$4 sm:$0xff]  }
  0x43   :  { %766 = vmatpush1.bf16.msra.mxu0 %v1994_v41  ;;  %807 = vmatpush1.bf16.msra.mxu1 %v1997_v42  ;;  %v2421_v39 = vsub.s32 0, %v2418_v38  ;;  %v107_v40 = vsub.s32 2, %v2418_v38  ;;  %v95_v41 = vld [vmem:[%s2555_s2] sm:$0xf]  ;;  %v2428_v42 = vsub.s32 1, %v2418_v38 }
  0x44   :  { %767 = vmatprep.subr.bf16.mxu0 %v2002_v43  ;;  %808 = vmatprep.subr.bf16.mxu1 %v2005_v44  ;;  %v111_v43 = vsub.s32 3, %v2418_v38 }
  0x45   :  { %v100_v44 = vrot.slane %v95_v41, %v2421_v39 }
  0x47   :  { %768 = vmatpush1.bf16.msra.mxu0 %v2000_v45  ;;  %809 = vmatpush1.bf16.msra.mxu1 %v2003_v46  ;;  %v108_v45 = vrot.slane %v95_v41, %v107_v40  ;;  %v104_v46 = vrot.slane %v95_v41, %v2428_v42 }
  0x48   :  { %769 = vmatprep.subr.bf16.mxu0 %v2008_v47  ;;  %810 = vmatprep.subr.bf16.mxu1 %v2011_v48  ;;  %v112_v47 = vrot.slane %v95_v41, %v111_v43  ;;  %v2140_v41 = vld [vmem:[#allocation4 + $0x1c4] ss:$16 sps:$4 sm:$0xff]  }
  0x4b   :  { %770 = vmatpush1.bf16.msra.mxu0 %v2006_v49  ;;  %811 = vmatpush1.bf16.msra.mxu1 %v2009_v50 }
  0x4c   :  { %771 = vmatprep.subr.bf16.mxu0 %v2014_v51  ;;  %812 = vmatprep.subr.bf16.mxu1 %v2017_v52 }
  0x4f   :  { %772 = vmatpush1.bf16.msra.mxu0 %v2012_v53  ;;  %813 = vmatpush1.bf16.msra.mxu1 %v2015_v54 }
  0x50   :  { %773 = vmatprep.subr.bf16.mxu0 %v2020_v55  ;;  %814 = vmatprep.subr.bf16.mxu1 %v2023_v56 }
  0x53   :  { %774 = vmatpush1.bf16.msra.mxu0 %v2018_v57  ;;  %815 = vmatpush1.bf16.msra.mxu1 %v2021_v58 }
  0x54   :  { %775 = vmatprep.subr.bf16.mxu0 %v2026_v59  ;;  %816 = vmatprep.subr.bf16.mxu1 %v2029_v60 }
  0x57   :  { %776 = vmatpush1.bf16.msra.mxu0 %v2024_v61  ;;  %817 = vmatpush1.bf16.msra.mxu1 %v2027_v62 }
  0x58   :  { %777 = vmatprep.subr.bf16.mxu0 %v2032_v63  ;;  %818 = vmatprep.subr.bf16.mxu1 %v2035_v0 }
  0x5b   :  { %778 = vmatpush1.bf16.msra.mxu0 %v2030_v1  ;;  %819 = vmatpush1.bf16.msra.mxu1 %v2033_v2 }
  0x5c   :  { %779 = vmatprep.subr.bf16.mxu0 %v2038_v3  ;;  %820 = vmatprep.subr.bf16.mxu1 %v2041_v4  ;;  %v2084_v3 = vld [vmem:[#allocation4 + $0xe0] ss:$16 sps:$4 sm:$0xff]   ;;  %v2087_v4 = vld [vmem:[#allocation4 + $0xe8] ss:$16 sps:$4 sm:$0xff]  }
  0x5f   :  { %780 = vmatpush2.bf16.msra.mxu0 %v2036_v5  ;;  %821 = vmatpush2.bf16.msra.mxu1 %v2039_v6  ;;  %v2092_v6 = vld [vmem:[#allocation4 + $0xc4] ss:$16 sps:$4 sm:$0xff]  }
  0x60   :  { %781 = vmatprep.subr.bf16.mxu0 %v2044_v7  ;;  %822 = vmatprep.subr.bf16.mxu1 %v2047_v8  ;;  %v2095_v7 = vld [vmem:[#allocation4 + $0xcc] ss:$16 sps:$4 sm:$0xff]   ;;  %v2090_v8 = vld [vmem:[#allocation4 + $0xc0] ss:$16 sps:$4 sm:$0xff]  }
  0x63   :  { %782 = vmatpush2.bf16.msra.mxu0 %v2042_v9  ;;  %823 = vmatpush2.bf16.msra.mxu1 %v2045_v10  ;;  %v2093_v9 = vld [vmem:[#allocation4 + $0xc8] ss:$16 sps:$4 sm:$0xff]   ;;  %v2098_v10 = vld [vmem:[#allocation4 + $0xa4] ss:$16 sps:$4 sm:$0xff]  }
  0x64   :  { %783 = vmatprep.subr.bf16.mxu0 %v2050_v11  ;;  %824 = vmatprep.subr.bf16.mxu1 %v2053_v12  ;;  %v2101_v11 = vld [vmem:[#allocation4 + $0xac] ss:$16 sps:$4 sm:$0xff]   ;;  %v2096_v12 = vld [vmem:[#allocation4 + $0xa0] ss:$16 sps:$4 sm:$0xff]  }
  0x67   :  { %784 = vmatpush2.bf16.msra.mxu0 %v2048_v13  ;;  %825 = vmatpush2.bf16.msra.mxu1 %v2051_v14  ;;  %v2099_v13 = vld [vmem:[#allocation4 + $0xa8] ss:$16 sps:$4 sm:$0xff]   ;;  %v2104_v14 = vld [vmem:[#allocation4 + $0x84] ss:$16 sps:$4 sm:$0xff]  }
  0x68   :  { %785 = vmatprep.subr.bf16.mxu0 %v2056_v15  ;;  %826 = vmatprep.subr.bf16.mxu1 %v2059_v16  ;;  %v2107_v15 = vld [vmem:[#allocation4 + $0x8c] ss:$16 sps:$4 sm:$0xff]   ;;  %v2102_v16 = vld [vmem:[#allocation4 + $0x80] ss:$16 sps:$4 sm:$0xff]  }
  0x6b   :  { %786 = vmatpush2.bf16.msra.mxu0 %v2054_v17  ;;  %827 = vmatpush2.bf16.msra.mxu1 %v2057_v18  ;;  %v2105_v17 = vld [vmem:[#allocation4 + $0x88] ss:$16 sps:$4 sm:$0xff]   ;;  %v2110_v18 = vld [vmem:[#allocation4 + $0x64] ss:$16 sps:$4 sm:$0xff]  }
  0x6c   :  { %787 = vmatprep.subr.bf16.mxu0 %v2062_v19  ;;  %828 = vmatprep.subr.bf16.mxu1 %v2065_v20  ;;  %v2113_v19 = vld [vmem:[#allocation4 + $0x6c] ss:$16 sps:$4 sm:$0xff]   ;;  %v2108_v20 = vld [vmem:[#allocation4 + $0x60] ss:$16 sps:$4 sm:$0xff]  }
  0x6f   :  { %788 = vmatpush2.bf16.msra.mxu0 %v2060_v21  ;;  %829 = vmatpush2.bf16.msra.mxu1 %v2063_v22  ;;  %v2111_v21 = vld [vmem:[#allocation4 + $0x68] ss:$16 sps:$4 sm:$0xff]   ;;  %v2116_v22 = vld [vmem:[#allocation4 + $0x44] ss:$16 sps:$4 sm:$0xff]  }
  0x70   :  { %789 = vmatprep.subr.bf16.mxu0 %v2068_v23  ;;  %830 = vmatprep.subr.bf16.mxu1 %v2071_v24  ;;  %v2119_v23 = vld [vmem:[#allocation4 + $0x4c] ss:$16 sps:$4 sm:$0xff]   ;;  %v2114_v24 = vld [vmem:[#allocation4 + $0x40] ss:$16 sps:$4 sm:$0xff]  }
  0x73   :  { %790 = vmatpush2.bf16.msra.mxu0 %v2066_v25  ;;  %831 = vmatpush2.bf16.msra.mxu1 %v2069_v26  ;;  %v2117_v25 = vld [vmem:[#allocation4 + $0x48] ss:$16 sps:$4 sm:$0xff]   ;;  %v2122_v26 = vld [vmem:[#allocation4 + $0x24] ss:$16 sps:$4 sm:$0xff]  }
  0x74   :  { %791 = vmatprep.subr.bf16.mxu0 %v2074_v27  ;;  %832 = vmatprep.subr.bf16.mxu1 %v2077_v28  ;;  %v2125_v27 = vld [vmem:[#allocation4 + $0x2c] ss:$16 sps:$4 sm:$0xff]   ;;  %v2120_v28 = vld [vmem:[#allocation4 + $0x20] ss:$16 sps:$4 sm:$0xff]  }
  0x77   :  { %792 = vmatpush2.bf16.msra.mxu0 %v2072_v29  ;;  %833 = vmatpush2.bf16.msra.mxu1 %v2075_v30  ;;  %v2123_v29 = vld [vmem:[#allocation4 + $0x28] ss:$16 sps:$4 sm:$0xff]   ;;  %v2128_v30 = vld [vmem:[#allocation4 + $0x4] ss:$16 sps:$4 sm:$0xff]  }
  0x78   :  { %793 = vmatprep.subr.bf16.mxu0 %v2080_v31  ;;  %834 = vmatprep.subr.bf16.mxu1 %v2083_v32  ;;  %v2131_v31 = vld [vmem:[#allocation4 + $0xc] ss:$16 sps:$4 sm:$0xff]   ;;  %v2126_v32 = vld [vmem:[#allocation4] ss:$16 sps:$4 sm:$0xff]  }
  0x7b   :  { %794 = vmatpush2.bf16.msra.mxu0 %v2078_v33  ;;  %835 = vmatpush2.bf16.msra.mxu1 %v2081_v34  ;;  %v2129_v33 = vld [vmem:[#allocation4 + $0x8] ss:$16 sps:$4 sm:$0xff]   ;;  %v2134_v34 = vld [vmem:[#allocation4 + $0x1e4] ss:$16 sps:$4 sm:$0xff]  }
  0x7c   :  { %1255 = vmatprep.subr.bf16.mxu0 %v2086_v35  ;;  %1296 = vmatprep.subr.bf16.mxu1 %v2089_v36  ;;  %v2137_v35 = vld [vmem:[#allocation4 + $0x1ec] ss:$16 sps:$4 sm:$0xff]   ;;  %v2132_v36 = vld [vmem:[#allocation4 + $0x1e0] ss:$16 sps:$4 sm:$0xff]  }
  0xfe   :  { %v311_v48 = vpop.f32.mrf.mxu0  ;;  %v352_v49 = vpop.f32.mrf.mxu1 }
  0xff   :  { %v312_v50 = vadd.f32 %v311_v48, %v100_v44  ;;  %v353_v51 = vadd.f32 %v352_v49, %v108_v45  ;;  %v2143_v44 = vld [vmem:[#allocation4 + $0x1cc] ss:$16 sps:$4 sm:$0xff]   ;;  %v2138_v45 = vld [vmem:[#allocation4 + $0x1c0] ss:$16 sps:$4 sm:$0xff]  }
 0x100   :  { %v313_v52 = vpop.f32.mrf.mxu0  ;;  %v354_v53 = vpop.f32.mrf.mxu1  ;;  %v2149_v48 = vld [vmem:[#allocation4 + $0x1ac] ss:$16 sps:$4 sm:$0xff]   ;;  %v2144_v49 = vld [vmem:[#allocation4 + $0x1a0] ss:$16 sps:$4 sm:$0xff]  }
 0x101   :  { %v361_v54 = vmax.f32 %v353_v51, 0.0  ;;  %v314_v55 = vadd.f32 %v313_v52, %v104_v46  ;;  %v355_v56 = vadd.f32 %v354_v53, %v112_v47  ;;  %v359_v57 = vmax.f32 %v312_v50, 0.0  ;;  %v2141_v46 = vld [vmem:[#allocation4 + $0x1c8] ss:$16 sps:$4 sm:$0xff]   ;;  %v2146_v47 = vld [vmem:[#allocation4 + $0x1a4] ss:$16 sps:$4 sm:$0xff]  }
 0x102   :  { %v315_v58 = vpop.f32.mrf.mxu0  ;;  %v356_v59 = vpop.f32.mrf.mxu1  ;;  %v2147_v50 = vld [vmem:[#allocation4 + $0x1a8] ss:$16 sps:$4 sm:$0xff]   ;;  %v2152_v51 = vld [vmem:[#allocation4 + $0x184] ss:$16 sps:$4 sm:$0xff]   ;;  %v2155_v52 = vld [vmem:[#allocation4 + $0x18c] ss:$16 sps:$4 sm:$0xff]  }
 0x103   :  { %v360_v60 = vmax.f32 %v314_v55, 0.0  ;;  %v362_v61 = vmax.f32 %v355_v56, 0.0  ;;  %v365_v62 = vpack.c.bf16 %v361_v54, %v361_v54  ;;  %v363_v5 = vpack.c.bf16 %v359_v57, %v359_v57  ;;  %v2150_v53 = vld [vmem:[#allocation4 + $0x180] ss:$16 sps:$4 sm:$0xff]   ;;  %v2153_v54 = vld [vmem:[#allocation4 + $0x188] ss:$16 sps:$4 sm:$0xff]  }
 0x104   :  { %v316_v63 = vpop.f32.mrf.mxu0  ;;  %v357_v0 = vpop.f32.mrf.mxu1  ;;  %v2158_v55 = vld [vmem:[#allocation4 + $0x164] ss:$16 sps:$4 sm:$0xff]   ;;  %v2161_v56 = vld [vmem:[#allocation4 + $0x16c] ss:$16 sps:$4 sm:$0xff]   ;;  %v2156_v57 = vld [vmem:[#allocation4 + $0x160] ss:$16 sps:$4 sm:$0xff]  }
 0x105   :  { %v364_v1 = vpack.c.bf16 %v360_v60, %v360_v60  ;;  %v366_v2 = vpack.c.bf16 %v362_v61, %v362_v61  ;;  %v2159_v58 = vld [vmem:[#allocation4 + $0x168] ss:$16 sps:$4 sm:$0xff]   ;;  %v2164_v59 = vld [vmem:[#allocation4 + $0x144] ss:$16 sps:$4 sm:$0xff]   ;;  %v2167_v60 = vld [vmem:[#allocation4 + $0x14c] ss:$16 sps:$4 sm:$0xff]  }
 0x106   :  { %v2162_v61 = vld [vmem:[#allocation4 + $0x140] ss:$16 sps:$4 sm:$0xff]   ;;  %v2170_v63 = vld [vmem:[#allocation4 + $0x124] ss:$16 sps:$4 sm:$0xff]   ;;  %v2173_v0 = vld [vmem:[#allocation4 + $0x12c] ss:$16 sps:$4 sm:$0xff]  }
 0x107   :  { %795 = vmatprep.mubr.bf16.mxu0 %v364_v1  ;;  %836 = vmatprep.mubr.bf16.mxu1 %v366_v2  ;;  %v2168_v1 = vld [vmem:[#allocation4 + $0x120] ss:$16 sps:$4 sm:$0xff]   ;;  %v2171_v2 = vld [vmem:[#allocation4 + $0x128] ss:$16 sps:$4 sm:$0xff]  }
 0x108   :  { %796 = vmatmul.mubr.bf16.vlgmr.msra.gmra.mxu0 %v363_v5  ;;  %837 = vmatmul.mubr.bf16.vlgmr.msra.gmra.mxu1 %v365_v62  ;;  %v2165_v62 = vld [vmem:[#allocation4 + $0x148] ss:$16 sps:$4 sm:$0xff]   ;;  %v2174_v5 = vld [vmem:[#allocation4 + $0x100] ss:$16 sps:$4 sm:$0xff]  }
 0x109   :  { %1256 = vmatpush1.bf16.msra.mxu0 %v2084_v3  ;;  %1297 = vmatpush1.bf16.msra.mxu1 %v2087_v4  ;;  %v2176_v3 = vld [vmem:[#allocation4 + $0x104] ss:$16 sps:$4 sm:$0xff]   ;;  %v2179_v4 = vld [vmem:[#allocation4 + $0x10c] ss:$16 sps:$4 sm:$0xff]  }
 0x10a   :  { %1257 = vmatprep.subr.bf16.mxu0 %v2092_v6  ;;  %1298 = vmatprep.subr.bf16.mxu1 %v2095_v7  ;;  %v2177_v6 = vld [vmem:[#allocation4 + $0x108] ss:$16 sps:$4 sm:$0xff]  }
 0x10b   :  { %v2180_v7 = vld [vmem:[%s2560_s7 + $0x78] sm:$0xff]  }
 0x10d   :  { %1258 = vmatpush1.bf16.msra.mxu0 %v2090_v8  ;;  %1299 = vmatpush1.bf16.msra.mxu1 %v2093_v9  ;;  %v2181_v8 = vld [vmem:[%s2560_s7 + $0xf8] sm:$0xff]   ;;  %v431_v9 = vld [vmem:[%s2557_s4] sm:$0x3] }
 0x10e   :  { %1259 = vmatprep.subr.bf16.mxu0 %v2098_v10  ;;  %1300 = vmatprep.subr.bf16.mxu1 %v2101_v11  ;;  %v436_v10 = vrot.slane %v431_v9, %v2421_v39  ;;  %v440_v11 = vrot.slane %v431_v9, %v2428_v42 }
 0x111   :  { %1260 = vmatpush1.bf16.msra.mxu0 %v2096_v12  ;;  %1301 = vmatpush1.bf16.msra.mxu1 %v2099_v13 }
 0x112   :  { %1261 = vmatprep.subr.bf16.mxu0 %v2104_v14  ;;  %1302 = vmatprep.subr.bf16.mxu1 %v2107_v15 }
 0x115   :  { %1262 = vmatpush1.bf16.msra.mxu0 %v2102_v16  ;;  %1303 = vmatpush1.bf16.msra.mxu1 %v2105_v17 }
 0x116   :  { %1263 = vmatprep.subr.bf16.mxu0 %v2110_v18  ;;  %1304 = vmatprep.subr.bf16.mxu1 %v2113_v19 }
 0x119   :  { %1264 = vmatpush1.bf16.msra.mxu0 %v2108_v20  ;;  %1305 = vmatpush1.bf16.msra.mxu1 %v2111_v21 }
 0x11a   :  { %1265 = vmatprep.subr.bf16.mxu0 %v2116_v22  ;;  %1306 = vmatprep.subr.bf16.mxu1 %v2119_v23 }
 0x11d   :  { %1266 = vmatpush1.bf16.msra.mxu0 %v2114_v24  ;;  %1307 = vmatpush1.bf16.msra.mxu1 %v2117_v25 }
 0x11e   :  { %1267 = vmatprep.subr.bf16.mxu0 %v2122_v26  ;;  %1308 = vmatprep.subr.bf16.mxu1 %v2125_v27  ;;  %v2182_v27 = vld [vmem:[%s2560_s7 + $0x38] sm:$0xff]  }
 0x121   :  { %1268 = vmatpush1.bf16.msra.mxu0 %v2120_v28  ;;  %1309 = vmatpush1.bf16.msra.mxu1 %v2123_v29  ;;  %v2183_v28 = vld [vmem:[%s2560_s7 + $0xb8] sm:$0xff]  }
 0x122   :  { %1269 = vmatprep.subr.bf16.mxu0 %v2128_v30  ;;  %1310 = vmatprep.subr.bf16.mxu1 %v2131_v31  ;;  %v2184_v30 = vld [vmem:[%s2560_s7 + $0x70] sm:$0xff]  }
 0x123   :  { %v2185_v31 = vld [vmem:[%s2560_s7 + $0xf0] sm:$0xff]  }
 0x125   :  { %1270 = vmatpush1.bf16.msra.mxu0 %v2126_v32  ;;  %1311 = vmatpush1.bf16.msra.mxu1 %v2129_v33  ;;  %v2186_v32 = vld [vmem:[%s2560_s7 + $0x30] sm:$0xff]  }
 0x126   :  { %1271 = vmatprep.subr.bf16.mxu0 %v2134_v34  ;;  %1312 = vmatprep.subr.bf16.mxu1 %v2137_v35  ;;  %v2187_v33 = vld [vmem:[%s2560_s7 + $0xb0] sm:$0xff]   ;;  %v2188_v34 = vld [vmem:[%s2560_s7 + $0x68] sm:$0xff]  }
 0x127   :  { %v2189_v35 = vld [vmem:[%s2560_s7 + $0xe8] sm:$0xff]  }
 0x129   :  { %1272 = vmatpush2.bf16.msra.mxu0 %v2132_v36  ;;  %1313 = vmatpush2.bf16.msra.mxu1 %v2135_v37  ;;  %v2190_v36 = vld [vmem:[%s2560_s7 + $0x28] sm:$0xff]  }
 0x12a   :  { %1273 = vmatprep.subr.bf16.mxu0 %v2140_v41  ;;  %1314 = vmatprep.subr.bf16.mxu1 %v2143_v44  ;;  %v2191_v37 = vld [vmem:[%s2560_s7 + $0xa8] sm:$0xff]   ;;  %v2192_v41 = vld [vmem:[%s2560_s7 + $0x60] sm:$0xff]  }
 0x12b   :  { %v2193_v44 = vld [vmem:[%s2560_s7 + $0xe0] sm:$0xff]  }
 0x12d   :  { %1274 = vmatpush2.bf16.msra.mxu0 %v2138_v45  ;;  %1315 = vmatpush2.bf16.msra.mxu1 %v2141_v46  ;;  %v2194_v45 = vld [vmem:[%s2560_s7 + $0x20] sm:$0xff]  }
 0x12e   :  { %1275 = vmatprep.subr.bf16.mxu0 %v2146_v47  ;;  %1316 = vmatprep.subr.bf16.mxu1 %v2149_v48  ;;  %v2195_v46 = vld [vmem:[%s2560_s7 + $0xa0] sm:$0xff]   ;;  %v2196_v47 = vld [vmem:[%s2560_s7 + $0x58] sm:$0xff]  }
 0x12f   :  { %v2197_v48 = vld [vmem:[%s2560_s7 + $0xd8] sm:$0xff]  }
 0x131   :  { %1276 = vmatpush2.bf16.msra.mxu0 %v2144_v49  ;;  %1317 = vmatpush2.bf16.msra.mxu1 %v2147_v50  ;;  %v2198_v49 = vld [vmem:[%s2560_s7 + $0x18] sm:$0xff]  }
 0x132   :  { %1277 = vmatprep.subr.bf16.mxu0 %v2152_v51  ;;  %1318 = vmatprep.subr.bf16.mxu1 %v2155_v52  ;;  %v2199_v50 = vld [vmem:[%s2560_s7 + $0x98] sm:$0xff]   ;;  %v2200_v51 = vld [vmem:[%s2560_s7 + $0x50] sm:$0xff]  }
 0x133   :  { %v2201_v52 = vld [vmem:[%s2560_s7 + $0xd0] sm:$0xff]  }
 0x135   :  { %1278 = vmatpush2.bf16.msra.mxu0 %v2150_v53  ;;  %1319 = vmatpush2.bf16.msra.mxu1 %v2153_v54  ;;  %v2202_v53 = vld [vmem:[%s2560_s7 + $0x10] sm:$0xff]  }
 0x136   :  { %1279 = vmatprep.subr.bf16.mxu0 %v2158_v55  ;;  %1320 = vmatprep.subr.bf16.mxu1 %v2161_v56  ;;  %v2203_v54 = vld [vmem:[%s2560_s7 + $0x90] sm:$0xff]   ;;  %v2204_v55 = vld [vmem:[%s2560_s7 + $0x48] sm:$0xff]  }
 0x137   :  { %v2205_v56 = vld [vmem:[%s2560_s7 + $0xc8] sm:$0xff]  }
 0x139   :  { %1280 = vmatpush2.bf16.msra.mxu0 %v2156_v57  ;;  %1321 = vmatpush2.bf16.msra.mxu1 %v2159_v58  ;;  %v2206_v57 = vld [vmem:[%s2560_s7 + $0x8] sm:$0xff]  }
 0x13a   :  { %1281 = vmatprep.subr.bf16.mxu0 %v2164_v59  ;;  %1322 = vmatprep.subr.bf16.mxu1 %v2167_v60  ;;  %v2207_v58 = vld [vmem:[%s2560_s7 + $0x88] sm:$0xff]   ;;  %v2208_v59 = vld [vmem:[%s2560_s7 + $0x40] sm:$0xff]  }
 0x13b   :  { %v2209_v60 = vld [vmem:[%s2560_s7 + $0xc0] sm:$0xff]  }
 0x13d   :  { %1282 = vmatpush2.bf16.msra.mxu0 %v2162_v61  ;;  %1323 = vmatpush2.bf16.msra.mxu1 %v2165_v62  ;;  %v2210_v61 = vld [vmem:[%s2560_s7] sm:$0xff]  }
 0x13e   :  { %1283 = vmatprep.subr.bf16.mxu0 %v2170_v63  ;;  %1324 = vmatprep.subr.bf16.mxu1 %v2173_v0  ;;  %v2211_v62 = vld [vmem:[%s2560_s7 + $0x80] sm:$0xff]  }
 0x13f   :  { %v913_v63 = vld [vmem:[%s2559_s6] sm:$0xf] }
 0x140   :  { %v918_v0 = vrot.slane %v913_v63, %v2421_v39 }
 0x141   :  { %1284 = vmatpush2.bf16.msra.mxu0 %v2168_v1  ;;  %1325 = vmatpush2.bf16.msra.mxu1 %v2171_v2  ;;  %v926_v1 = vrot.slane %v913_v63, %v107_v40  ;;  %v922_v2 = vrot.slane %v913_v63, %v2428_v42 }
 0x142   :  { %1285 = vmatprep.subr.bf16.mxu0 %v2176_v3  ;;  %1326 = vmatprep.subr.bf16.mxu1 %v2179_v4  ;;  %v930_v3 = vrot.slane %v913_v63, %v111_v43 }
 0x145   :  { %1286 = vmatpush2.bf16.msra.mxu0 %v2174_v5  ;;  %1327 = vmatpush2.bf16.msra.mxu1 %v2177_v6 }
 0x146   :  { %1889 = vmatprep.subr.bf16.mxu0 %v2180_v7  ;;  %1911 = vmatprep.subr.bf16.mxu1 %v2181_v8 }
 0x1c8   :  { %v797_v12 = vpop.f32.mrf.mxu0  ;;  %v838_v13 = vpop.f32.mrf.mxu1 }
 0x1c9   :  { %v798_v14 = vadd.f32 %v797_v12, %v436_v10 }
 0x1ca   :  { %v799_v15 = vpop.f32.mrf.mxu0  ;;  %v840_v16 = vpop.f32.mrf.mxu1 }
 0x1cb   :  { %v839_v17 = vadd.f32 %v838_v13, %v798_v14  ;;  %v800_v18 = vadd.f32 %v799_v15, %v440_v11 }
 0x1cc   :  { %v801_v19 = vpop.f32.mrf.mxu0  ;;  %v842_v20 = vpop.f32.mrf.mxu1 }
 0x1cd   :  { %v841_v21 = vadd.f32 %v840_v16, %v800_v18  ;;  %v845_v22 = vmax.f32 %v839_v17, 0.0 }
 0x1ce   :  { %v802_v23 = vpop.f32.mrf.mxu0  ;;  %v843_v24 = vpop.f32.mrf.mxu1 }
 0x1cf   :  { %v846_v25 = vmax.f32 %v841_v21, 0.0  ;;  %v847_v29 = vpack.c.bf16 %v845_v22, %v845_v22  ;;  %v1856_v21 = vld [vmem:[%s2561_s8] ss:$0 sm:$0xff] }
 0x1d1   :  { %v848_v26 = vpack.c.bf16 %v846_v25, %v846_v25 }
 0x1d3   :  { %1287 = vmatprep.mubr.bf16.mxu0 %v848_v26  ;;  %1328 = vmatprep.mubr.bf16.mxu1 %v848_v26 }
 0x1d4   :  { %1288 = vmatmul.mubr.bf16.vlgmr.msra.gmra.mxu0 %v847_v29  ;;  %1329 = vmatmul.mubr.bf16.vlgmr.msra.gmra.mxu1 %v847_v29 }
 0x1d5   :  { %1890 = vmatpush3.bf16.msra.mxu0 %v2182_v27  ;;  %1912 = vmatpush3.bf16.msra.mxu1 %v2183_v28 }
 0x1d6   :  { %1891 = vmatprep.subr.bf16.mxu0 %v2184_v30  ;;  %1913 = vmatprep.subr.bf16.mxu1 %v2185_v31 }
 0x1d9   :  { %1892 = vmatpush3.bf16.msra.mxu0 %v2186_v32  ;;  %1914 = vmatpush3.bf16.msra.mxu1 %v2187_v33 }
 0x1da   :  { %1893 = vmatprep.subr.bf16.mxu0 %v2188_v34  ;;  %1915 = vmatprep.subr.bf16.mxu1 %v2189_v35 }
 0x1dd   :  { %1894 = vmatpush3.bf16.msra.mxu0 %v2190_v36  ;;  %1916 = vmatpush3.bf16.msra.mxu1 %v2191_v37 }
 0x1de   :  { %1895 = vmatprep.subr.bf16.mxu0 %v2192_v41  ;;  %1917 = vmatprep.subr.bf16.mxu1 %v2193_v44 }
 0x1e1   :  { %1896 = vmatpush3.bf16.msra.mxu0 %v2194_v45  ;;  %1918 = vmatpush3.bf16.msra.mxu1 %v2195_v46 }
 0x1e2   :  { %1897 = vmatprep.subr.bf16.mxu0 %v2196_v47  ;;  %1919 = vmatprep.subr.bf16.mxu1 %v2197_v48 }
 0x1e5   :  { %1898 = vmatpush3.bf16.msra.mxu0 %v2198_v49  ;;  %1920 = vmatpush3.bf16.msra.mxu1 %v2199_v50 }
 0x1e6   :  { %1899 = vmatprep.subr.bf16.mxu0 %v2200_v51  ;;  %1921 = vmatprep.subr.bf16.mxu1 %v2201_v52 }
 0x1e9   :  { %1900 = vmatpush3.bf16.msra.mxu0 %v2202_v53  ;;  %1922 = vmatpush3.bf16.msra.mxu1 %v2203_v54 }
 0x1ea   :  { %1901 = vmatprep.subr.bf16.mxu0 %v2204_v55  ;;  %1923 = vmatprep.subr.bf16.mxu1 %v2205_v56 }
 0x1ed   :  { %1902 = vmatpush3.bf16.msra.mxu0 %v2206_v57  ;;  %1924 = vmatpush3.bf16.msra.mxu1 %v2207_v58 }
 0x1ee   :  { %1903 = vmatprep.subr.bf16.mxu0 %v2208_v59  ;;  %1925 = vmatprep.subr.bf16.mxu1 %v2209_v60 }
 0x1f1   :  { %1904 = vmatpush3.bf16.msra.mxu0 %v2210_v61  ;;  %1926 = vmatpush3.bf16.msra.mxu1 %v2211_v62 }
 0x294   :  { %v1289_v4 = vpop.f32.mrf.mxu0  ;;  %v1330_v5 = vpop.f32.mrf.mxu1 }
 0x295   :  { %v1290_v6 = vadd.f32 %v1289_v4, %v918_v0  ;;  %v1331_v7 = vadd.f32 %v1330_v5, %v926_v1 }
 0x296   :  { %v1291_v8 = vpop.f32.mrf.mxu0  ;;  %v1332_v9 = vpop.f32.mrf.mxu1 }
 0x297   :  { %v1292_v10 = vadd.f32 %v1291_v8, %v922_v2  ;;  %v1333_v11 = vadd.f32 %v1332_v9, %v930_v3  ;;  %v1337_v12 = vmax.f32 %v1290_v6, 0.0  ;;  %v1339_v13 = vmax.f32 %v1331_v7, 0.0 }
 0x298   :  { %v1293_v14 = vpop.f32.mrf.mxu0  ;;  %v1334_v39 = vpop.f32.mrf.mxu1 }
 0x299   :  { %v1338_v15 = vmax.f32 %v1292_v10, 0.0  ;;  %v1340_v16 = vmax.f32 %v1333_v11, 0.0  ;;  %v1341_v38 = vpack.c.bf16 %v1337_v12, %v1337_v12  ;;  %v1343_v43 = vpack.c.bf16 %v1339_v13, %v1339_v13 }
 0x29a   :  { %v1294_v40 = vpop.f32.mrf.mxu0  ;;  %v1335_v17 = vpop.f32.mrf.mxu1 }
 0x29b   :  { %v1342_v42 = vpack.c.bf16 %v1338_v15, %v1338_v15  ;;  %v1344_v18 = vpack.c.bf16 %v1340_v16, %v1340_v16 }
 0x29d   :  { %1640 = vmatprep.mubr.bf16.mxu0 %v1342_v42  ;;  %1680 = vmatprep.mubr.bf16.mxu1 %v1344_v18 }
 0x29e   :  { %1641 = vmatmul.mubr.bf16.vlgmr.msra.gmra.mxu0 %v1341_v38  ;;  %1681 = vmatmul.mubr.bf16.vlgmr.msra.gmra.mxu1 %v1343_v43 }
 0x35e   :  { %v1905_v19 = vpop.f32.mrf.mxu0  ;;  %v1927_v20 = vpop.f32.mrf.mxu1 }
 0x360   :  { %v1906_v22 = vpop.f32.mrf.mxu0  ;;  %v1928_v23 = vpop.f32.mrf.mxu1 }
 0x361   :  { %v1907_v24 = vadd.f32 %v1906_v22, %v1905_v19  ;;  %v1929_v28 = vadd.f32 %v1928_v23, %v1927_v20 }
 0x362   :  { %v1908_v25 = vpop.f32.mrf.mxu0  ;;  %v1930_v26 = vpop.f32.mrf.mxu1 }
 0x363   :  { %v1643_v27 = vadd.f32 %v1907_v24, %v1856_v21 }
 0x364   :  { %v1909_v29 = vpop.f32.mrf.mxu0  ;;  %v1931_v30 = vpop.f32.mrf.mxu1 }
 0x365   :  { %v1683_v31 = vadd.f32 %v1929_v28, %v1643_v27 }
 0x367   :  { %1689 = vst.msk [vmem:[%s2562_s9] sm:$0xff] %vm1688_vm0, %v1683_v31 }
 0x368   :  { %1694 = vsyncpa [#allocation3], 1 }
 0x369   :  { %1695 = vsyncpa [#allocation5], 1 }

</bundles_post_ra>
